<compile_context>
chip_gen: v7x
topology: tpu7x:2x2x1
jax: 0.10.0
libtpu: 0.0.40
codegen_flags: <defaults>
</compile_context>

<pallas_src>
import functools

import jax
import jax.numpy as jnp
import numpy as np
from jax.experimental import pallas as pl
from jax.experimental.pallas import tpu as pltpu


def _norm_swish_kernel(x_ref, gamma_ref, beta_ref, o_ref, *, eps, inv_n):
    # x_ref:     (1, GB, Cg*HW)  one batch element, GB groups; rows are lane-dense
    # gamma_ref: (GB, Cg*HW)     per-channel affine pre-expanded to lane layout
    # beta_ref:  (GB, Cg*HW)
    # o_ref:     (1, GB, Cg*HW)
    x = x_ref[...].astype(jnp.float32)

    # Single-pass statistics: two lane reductions issue back-to-back on the XLU.
    s1 = jnp.sum(x, axis=-1, keepdims=True)            # (1, GB, 1)
    s2 = jnp.sum(x * x, axis=-1, keepdims=True)        # (1, GB, 1)
    mean = s1 * inv_n
    var = jnp.maximum(s2 * inv_n - mean * mean, 0.0)   # biased var (PyTorch GroupNorm)
    rstd = jax.lax.rsqrt(var + eps)                    # (1, GB, 1)

    # Fused normalization + affine: one FMA pass over the tile.
    gamma = gamma_ref[...].astype(jnp.float32)[None]   # (1, GB, Cg*HW)
    beta = beta_ref[...].astype(jnp.float32)[None]
    scale = gamma * rstd
    bias = beta - mean * scale
    y = x * scale + bias

    # Swish: y * sigmoid(y).  exp + reciprocal land on the EUP bundle slot.
    # (approx=True would be faster but too coarse for the 1e-5 reference check.)
    sig = pl.reciprocal(1.0 + jnp.exp(-y), approx=False)
    o_ref[...] = (y * sig).astype(o_ref.dtype)


def _pick_group_block(num_groups, row_bytes, *, x_block_budget_bytes):
    """Largest divisor of G (preferring multiples of 8 for sublane alignment)
    whose x-block fits the per-buffer VMEM budget.  Biggest-tile-that-fits:
    pipelining steps come from the batch grid axis, so we do not artificially
    force many group-blocks."""
    divisors = [d for d in range(num_groups, 0, -1) if num_groups % d == 0]
    preferred = [d for d in divisors if d % 8 == 0] or divisors
    for d in preferred:
        if d * row_bytes <= x_block_budget_bytes:
            return d
    return preferred[-1]


def norm_swish(x, gamma, beta, *, num_groups=32, eps=1e-6):
    """GroupNorm(num_groups, affine=True) + Swish.  x: (B, C, H, W) NCHW."""
    B, C, H, W = x.shape
    assert C % num_groups == 0, "channels must be divisible by num_groups"
    G = num_groups
    Cg = C // G
    HW = H * W
    CgHW = Cg * HW

    # Lane-dense view: one row per (batch, group); the last dim maps to lanes.
    xr = x.reshape(B, G, CgHW)
    # Pre-expand per-channel affine params to the kernel's (G, Cg*HW) lane layout
    # (one-time slab built by XLA; removes all in-kernel broadcast/reshape work).
    gr = jnp.repeat(gamma.astype(jnp.float32).reshape(G, Cg), HW, axis=1)
    br = jnp.repeat(beta.astype(jnp.float32).reshape(G, Cg), HW, axis=1)

    x_item = max(x.dtype.itemsize, 4)
    # Budget: keep x + out + gamma + beta, double-buffered, under ~16 MiB total.
    gb = _pick_group_block(G, CgHW * x_item,
                           x_block_budget_bytes=2 * 1024 * 1024)
    n_gblocks = G // gb

    kernel = functools.partial(
        _norm_swish_kernel, eps=float(eps), inv_n=float(1.0 / CgHW))

    # Purely memory-bound kernel: advisory cost hint for XLA's scheduler.
    n_elems = B * C * H * W
    cost = pl.CostEstimate(
        flops=10 * n_elems,
        transcendentals=n_elems,
        bytes_accessed=2 * n_elems * x.dtype.itemsize + 2 * G * CgHW * 4,
    )

    out = pl.pallas_call(
        kernel,
        out_shape=jax.ShapeDtypeStruct((B, G, CgHW), x.dtype),
        grid_spec=pltpu.PrefetchScalarGridSpec(
            num_scalar_prefetch=0,
            # Group-blocks outer, batch inner: gamma/beta block index is constant
            # along the inner (batch) axis, so the param slabs are not re-fetched
            # on every grid step.
            grid=(n_gblocks, B),
            in_specs=[
                pl.BlockSpec((1, gb, CgHW), lambda g, b: (b, g, 0)),
                pl.BlockSpec((gb, CgHW), lambda g, b: (g, 0)),
                pl.BlockSpec((gb, CgHW), lambda g, b: (g, 0)),
            ],
            out_specs=pl.BlockSpec((1, gb, CgHW), lambda g, b: (b, g, 0)),
        ),
        compiler_params=pltpu.CompilerParams(
            dimension_semantics=("parallel", "parallel"),
            vmem_limit_bytes=32 * 1024 * 1024,
        ),
        cost_estimate=cost,
    )(xr, gr, br)

    return out.reshape(B, C, H, W)


def _reference(x, gamma, beta, *, num_groups=32, eps=1e-6):
    B, C, H, W = x.shape
    G = num_groups
    xr = x.reshape(B, G, C // G, H * W).astype(jnp.float32)
    mean = jnp.mean(xr, axis=(2, 3), keepdims=True)
    var = jnp.mean((xr - mean) ** 2, axis=(2, 3), keepdims=True)
    xhat = ((xr - mean) * jax.lax.rsqrt(var + eps)).reshape(B, C, H, W)
    y = xhat * gamma[None, :, None, None] + beta[None, :, None, None]
    return (y * jax.nn.sigmoid(y)).astype(x.dtype)


if __name__ == "__main__":
    key = jax.random.PRNGKey(0)
    k_x, k_g, k_b = jax.random.split(key, 3)

    B, C, H, W = 2, 64, 8, 8      # in_channels=64, 32 groups -> 2 channels/group
    NUM_GROUPS = 32
    EPS = 1e-6

    x = jax.random.normal(k_x, (B, C, H, W), dtype=jnp.float32)
    # Deterministic synthetic affine parameters (GroupNorm weight / bias).
    gamma = 1.0 + 0.1 * jax.random.normal(k_g, (C,), dtype=jnp.float32)
    beta = 0.1 * jax.random.normal(k_b, (C,), dtype=jnp.float32)

    out = norm_swish(x, gamma, beta, num_groups=NUM_GROUPS, eps=EPS)
    out = jax.block_until_ready(out)

    ref = jax.block_until_ready(
        _reference(x, gamma, beta, num_groups=NUM_GROUPS, eps=EPS)
    )
    np.testing.assert_allclose(np.asarray(out), np.asarray(ref),
                               rtol=1e-5, atol=1e-5)

    print("KERNEL_OK")
</pallas_src>

<mosaic_0001>
module attributes {stable_mosaic.version = 11 : i64} {
  func.func @_norm_swish_kernel(%arg0: i32, %arg1: i32, %arg2: memref<1x32x128xf32, #tpu.memory_space<vmem>>, %arg3: memref<32x128xf32, #tpu.memory_space<vmem>>, %arg4: memref<32x128xf32, #tpu.memory_space<vmem>>, %arg5: memref<1x32x128xf32, #tpu.memory_space<vmem>>) attributes {dimension_semantics = [#tpu.dimension_semantics<parallel>, #tpu.dimension_semantics<parallel>], iteration_bounds = array<i64: 1, 2>, scalar_prefetch = 0 : i64, scratch_operands = 0 : i64, tpu.core_type = #tpu.core_type<tc>, window_params = [{transform_indices = @transform_0, window_bounds = array<i64: 1, 32, 128>}, {transform_indices = @transform_1, window_bounds = array<i64: 32, 128>}, {transform_indices = @transform_2, window_bounds = array<i64: 32, 128>}, {transform_indices = @transform_3, window_bounds = array<i64: 1, 32, 128>}]} {
    %c0 = arith.constant 0 : index
    %c0_0 = arith.constant 0 : index
    %c0_1 = arith.constant 0 : index
    %0 = vector.load %arg2[%c0, %c0_0, %c0_1] : memref<1x32x128xf32, #tpu.memory_space<vmem>>, vector<1x32x128xf32>
    %cst = arith.constant dense<0.000000e+00> : vector<1x32xf32>
    %1 = vector.multi_reduction <add>, %0, %cst [2] : vector<1x32x128xf32> to vector<1x32xf32>
    %2 = vector.shape_cast %1 : vector<1x32xf32> to vector<1x32x1xf32>
    %3 = arith.mulf %0, %0 : vector<1x32x128xf32>
    %cst_2 = arith.constant dense<0.000000e+00> : vector<1x32xf32>
    %4 = vector.multi_reduction <add>, %3, %cst_2 [2] : vector<1x32x128xf32> to vector<1x32xf32>
    %5 = vector.shape_cast %4 : vector<1x32xf32> to vector<1x32x1xf32>
    %cst_3 = arith.constant 7.812500e-03 : f32
    %6 = vector.broadcast %cst_3 : f32 to vector<1x32x1xf32>
    %7 = arith.mulf %2, %6 : vector<1x32x1xf32>
    %cst_4 = arith.constant 7.812500e-03 : f32
    %8 = vector.broadcast %cst_4 : f32 to vector<1x32x1xf32>
    %9 = arith.mulf %5, %8 : vector<1x32x1xf32>
    %10 = arith.mulf %7, %7 : vector<1x32x1xf32>
    %11 = arith.subf %9, %10 : vector<1x32x1xf32>
    %cst_5 = arith.constant 0.000000e+00 : f32
    %12 = vector.broadcast %cst_5 : f32 to vector<1x32x1xf32>
    %13 = arith.maximumf %11, %12 : vector<1x32x1xf32>
    %cst_6 = arith.constant 9.99999997E-7 : f32
    %14 = vector.broadcast %cst_6 : f32 to vector<1x32x1xf32>
    %15 = arith.addf %13, %14 : vector<1x32x1xf32>
    %16 = math.rsqrt %15 : vector<1x32x1xf32>
    %c0_7 = arith.constant 0 : index
    %c0_8 = arith.constant 0 : index
    %17 = vector.load %arg3[%c0_7, %c0_8] : memref<32x128xf32, #tpu.memory_space<vmem>>, vector<32x128xf32>
    %18 = vector.shape_cast %17 : vector<32x128xf32> to vector<1x32x128xf32>
    %c0_9 = arith.constant 0 : index
    %c0_10 = arith.constant 0 : index
    %19 = vector.load %arg4[%c0_9, %c0_10] : memref<32x128xf32, #tpu.memory_space<vmem>>, vector<32x128xf32>
    %20 = vector.shape_cast %19 : vector<32x128xf32> to vector<1x32x128xf32>
    %21 = vector.broadcast %16 : vector<1x32x1xf32> to vector<1x32x128xf32>
    %22 = arith.mulf %18, %21 : vector<1x32x128xf32>
    %23 = vector.broadcast %7 : vector<1x32x1xf32> to vector<1x32x128xf32>
    %24 = arith.mulf %23, %22 : vector<1x32x128xf32>
    %25 = arith.subf %20, %24 : vector<1x32x128xf32>
    %26 = arith.mulf %0, %22 : vector<1x32x128xf32>
    %27 = arith.addf %26, %25 : vector<1x32x128xf32>
    %cst_11 = arith.constant 0.000000e+00 : f32
    %28 = vector.broadcast %cst_11 : f32 to vector<1x32x128xf32>
    %29 = arith.subf %28, %27 : vector<1x32x128xf32>
    %30 = math.exp %29 : vector<1x32x128xf32>
    %cst_12 = arith.constant 1.000000e+00 : f32
    %31 = vector.broadcast %cst_12 : f32 to vector<1x32x128xf32>
    %32 = arith.addf %31, %30 : vector<1x32x128xf32>
    %33 = tpu.reciprocal %32 : vector<1x32x128xf32> -> vector<1x32x128xf32>
    %34 = arith.mulf %27, %33 : vector<1x32x128xf32>
    %c0_13 = arith.constant 0 : index
    %c0_14 = arith.constant 0 : index
    %c0_15 = arith.constant 0 : index
    %35 = vector.load %arg5[%c0_13, %c0_14, %c0_15] : memref<1x32x128xf32, #tpu.memory_space<vmem>>, vector<1x32x128xf32>
    tpu.vector_store %arg5[%c0_13, %c0_14, %c0_15], %34 {strides = array<i32>} : memref<1x32x128xf32, #tpu.memory_space<vmem>>, vector<1x32x128xf32>,
    return
  }
  func.func @transform_0(%arg0: i32, %arg1: i32) -> (i32, i32, i32) {
    %c0_i32 = arith.constant 0 : i32
    %c0_i32_0 = arith.constant 0 : i32
    return %arg1, %arg0, %c0_i32 : i32, i32, i32
  }
  func.func @transform_1(%arg0: i32, %arg1: i32) -> (i32, i32) {
    %c0_i32 = arith.constant 0 : i32
    %c0_i32_0 = arith.constant 0 : i32
    return %arg0, %c0_i32 : i32, i32
  }
  func.func @transform_2(%arg0: i32, %arg1: i32) -> (i32, i32) {
    %c0_i32 = arith.constant 0 : i32
    %c0_i32_0 = arith.constant 0 : i32
    return %arg0, %c0_i32 : i32, i32
  }
  func.func @transform_3(%arg0: i32, %arg1: i32) -> (i32, i32, i32) {
    %c0_i32 = arith.constant 0 : i32
    %c0_i32_0 = arith.constant 0 : i32
    return %arg1, %arg0, %c0_i32 : i32, i32, i32
  }
}

</mosaic_0001>

<bundles_post_ra>
// kernel: tpu_custom_call.1
= control target key start
LH: loop header
LB: loop body
LE: loop exit
PB: predicated region body
PF: predicated region fallthrough
CT: control target
= control target key end

     0   :  { %8 = vsyncpa [#allocation3], 0  ;;  %s1110_s0 = inlined_call_operand.hbm [shape: f32[2,32,128], index: 0, kind: input, shape index: {}]   ;;  %s1111_s1 = inlined_call_operand.hbm [shape: f32[32,128], index: 1, kind: input, shape index: {}]   ;;  %s1112_s2 = inlined_call_operand.hbm [shape: f32[32,128], index: 2, kind: input, shape index: {}]   ;;  %s1113_s3 = inlined_call_operand.hbm [shape: f32[2,32,128], index: 3, kind: output, shape index: {}]  }
   0x1   :  { %10 = vsyncpa [#allocation3 + $0x1], 0 }
   0x2   :  { %11 = vsyncpa [#allocation6], 0 }
   0x3   :  { %12 = vsyncpa [#allocation4], 0 }
   0x4   :  { %14 = vsyncpa [#allocation4 + $0x1], 0  ;;  %s824_s12 = smov 0   ;;  %s826_s13 = smov 0  }
   0x5   :  { %s828_s14 = smov 0   ;;  %s830_s15 = smov 0  }
   0x6   :  { %s832_s16 = smov 0   ;;  %s834_s17 = smov 0  }
   0x7 LB: > { %s490_s18 = sadd.s32 4294967295, %s794_s17   ;;  %s491_s19 = sadd.s32 4294967294, %s794_s17   ;;  %s794_s17 = sphi %s834_s17, %s20_s17   ;;  %s790_s16 = sphi %s832_s16, %s1135_s16   ;;  %s786_s15 = sphi %s830_s15, %s1134_s15   ;;  %s782_s14 = sphi %s828_s14, %s1133_s14   ;;  %s778_s13 = sphi %s826_s13, %s1132_s13   ;;  %s774_s12 = sphi %s824_s12, %s1131_s12  }
   0x8   : > { %p54_p0 = scmp.ne.s32.totalorder %s778_s13, %s774_s12  ;;  %p858_p1 = scmp.eq.s32.totalorder %s490_s18, 0 }
   0x9   : > { %p862_p2 = scmp.eq.s32.totalorder %s490_s18, 1  ;;  %p138_p3 = scmp.eq.s32.totalorder %s491_s19, 1 }
   0xa   : > { %s1118_s20 = scalar_select %p858_p1, 1, 0 }
   0xb   : > { %p868_p4 = por %p858_p1, %p54_p0  ;;  %p492_p5 = scmp.ge.s32.totalorder %s794_s17, 1 }
   0xc   : > { %p873_p6 = por %p138_p3, %p54_p0  ;;  %p145_p7 = scmp.lt.s32.totalorder %s794_s17, 3 }
   0xd   : > { %s1120_s22 = scalar_select %p868_p4, 1, 0 }
   0xe   : > { %s1121_s23 = scalar_select %p873_p6, 1, 0 }
   0xf   : > { %p878_p8 = pnand %p492_p5, %p145_p7  ;;  %s796_s25 = smov [#allocation5]  }
  0x10   : > { %s160_s26 = sshll.u32 %s796_s25, 4  ;;  %s797_s28 = smov [#allocation7]   ;;  %s882_s26 = int_to_ptr.vmem [resolvable:$true] %s160_s26 }
  0x11   : > { %p523_p9 = pneg %p878_p8  ;;  %s176_s29 = sshll.u32 %s797_s28, 4  ;;  %s893_s29 = int_to_ptr.vmem [resolvable:$true] %s176_s29 }
  0x12   : > { %s622_s5 = scalar_lea.hbm %s1111_s1, 512 }
  0x13   : > { %p889_p11 = pnand %p523_p9, %p858_p1  ;;  %p623_p12 = scmp.ne.s32.totalorder %s1111_s1, %s622_s5 }
  0x14   : > { %p629_p5 = scmp.lt.u32.totalorder %s622_s5, %s1111_s1 }
  0x15   : > { %p624_p13 = pneg %p889_p11 }
  0x17   : > { %p625_p0 = pnand %p624_p13, %p623_p12 }
  0x19   : > { %p626_p3 = pneg %p625_p0 }
  0x1b   : > { %p631_p7 = pnand %p629_p5, %p626_p3 }
  0x1d   : > { %634 = shalt.err (!%p631_p7)
}
  0x1e   : > { %s635_s10 = scalar_lea.vmem %s882_s26, 512  ;;  %p643_p1 = scmp.lt.s32.totalorder %s882_s26, %s882_s26 }
  0x1f   : > { %p636_p9 = scmp.ne.s32.totalorder %s882_s26, %s635_s10  ;;  %p644_p12 = scmp.lt.s32.totalorder %s635_s10, %s635_s10 }
  0x21   : > { %p638_p10 = pnand %p636_p9, %p624_p13  ;;  %p645_p0 = por %p644_p12, %p643_p1 }
  0x23   : > { %p639_p6 = pneg %p638_p10 }
  0x25   : > { %p646_p4 = pnand %p645_p0, %p639_p6 }
  0x27   : > { %649 = shalt.err (!%p646_p4)
}
  0x28   : > { %s798_s11 = smov 128   ;;  %s799_s18 = smov 8  }
  0x29   : > { %526 = dma.hbm_to_vmem [thread:$0]  (!%p889_p11), %s1111_s1, 512, %s882_s26, [#allocation6], %s798_s11, %s798_s11, %s799_s18  }
  0x2a   : > { %s650_s4 = scalar_lea.hbm %s1112_s2, 512 }
  0x2b   : > { %p651_p1 = scmp.ne.s32.totalorder %s1112_s2, %s650_s4  ;;  %p657_p10 = scmp.lt.u32.totalorder %s650_s4, %s1112_s2 }
  0x2d   : > { %p653_p4 = pnand %p651_p1, %p624_p13 }
  0x2f   : > { %p654_p6 = pneg %p653_p4 }
  0x31   : > { %p659_p3 = pnand %p657_p10, %p654_p6 }
  0x33   : > { %662 = shalt.err (!%p659_p3)
}
  0x34   : > { %s663_s26 = scalar_lea.vmem %s893_s29, 512  ;;  %p671_p12 = scmp.lt.s32.totalorder %s893_s29, %s893_s29 }
  0x35   : > { %p664_p5 = scmp.ne.s32.totalorder %s893_s29, %s663_s26  ;;  %p672_p0 = scmp.lt.s32.totalorder %s663_s26, %s663_s26 }
  0x37   : > { %p666_p7 = pnand %p664_p5, %p624_p13  ;;  %p673_p1 = por %p672_p0, %p671_p12 }
  0x39   : > { %p667_p9 = pneg %p666_p7 }
  0x3b   : > { %p674_p4 = pnand %p673_p1, %p667_p9 }
  0x3d   : > { %677 = shalt.err (!%p674_p4)
}
  0x3e   : > { %529 = dma.hbm_to_vmem [thread:$0]  (!%p889_p11), %s1112_s2, 512, %s893_s29, [#allocation6], %s798_s11, %s798_s11, %s799_s18  }
  0x3f   : > { %s29_s27 = sadd.s32 1, %s790_s16  ;;  %s41_s19 = sadd.s32 1, %s782_s14 }
  0x40   : > { %p30_p13 = scmp.ge.s32.totalorder %s29_s27, 2  ;;  %p48_p6 = scmp.ne.s32.totalorder %s782_s14, %s778_s13 }
  0x41   : > { %p49_p10 = scmp.eq.s32.totalorder %s794_s17, 0  ;;  %p540_p3 = scmp.lt.s32.totalorder %s794_s17, 2 }
  0x42   : > { %s1137_s27 = smov (%p30_p13, %s29_s27), 0  ;;  %p963_p7 = por %p862_p2, %p48_p6 }
  0x43   : > { %p50_p5 = por %p49_p10, %p48_p6  ;;  %s36_s28 = ssub.s32 %s790_s16, %s1137_s27 }
  0x44   : > { %s1124_s25 = scalar_select %p963_p7, 1, 0 }
  0x45   : > { %s190_s30 = sand.u32 1, %s782_s14   ;;  %p39_p9 = scmp.eq.s32.totalorder %s36_s28, 0 }
  0x46   : > { %s496_s29 = sshll.u32 %s190_s30, 5  ;;  %s509_s4 = sshll.u32 %s790_s16, 9 }
  0x47   : > { %s972_s5 = scalar_select %p39_p9, %s782_s14, %s41_s19  }
  0x48   : > { %s977_s8 = scalar_lea.hbm %s1110_s0, %s509_s4  ;;  %s194_s21 = scalar_lea.vmem [#allocation2], %s496_s29 }
  0x49   : > { %s203_s26 = sshll.u32 %s194_s21, 4  ;;  %p981_p2 = pnand %p540_p3, %p50_p5  ;;  %s985_s26 = int_to_ptr.vmem [resolvable:$true] %s203_s26 }
  0x4a   : > { %s987_s10 = scalar_lea.sflag [#allocation3], %s190_s30  ;;  %s678_s19 = scalar_lea.hbm %s977_s8, 512 }
  0x4b   : > { %p679_p11 = scmp.ne.s32.totalorder %s977_s8, %s678_s19  ;;  %p680_p12 = pneg %p981_p2 }
  0x4c   : > { %s683_s4 = scalar_lea.hbm %s1110_s0, 1024  ;;  %p684_p4 = scmp.lt.u32.totalorder %s977_s8, %s1110_s0 }
  0x4d   : > { %p681_p0 = pnand %p680_p12, %p679_p11  ;;  %p685_p13 = scmp.lt.u32.totalorder %s683_s4, %s678_s19 }
  0x4e   : > { %p687_p10 = scmp.lt.u32.totalorder %s678_s19, %s977_s8 }
  0x4f   : > { %p682_p1 = pneg %p681_p0  ;;  %p686_p6 = por %p685_p13, %p684_p4 }
  0x51   : > { %p688_p3 = por %p687_p10, %p686_p6 }
  0x53   : > { %p689_p5 = pnand %p688_p3, %p682_p1 }
  0x55   : > { %692 = shalt.err (!%p689_p5)
}
  0x56   : > { %s693_s30 = scalar_lea.vmem %s985_s26, 512  ;;  %s800_s21 = smov [#allocation2]  }
  0x57   : > { %p694_p9 = scmp.ne.s32.totalorder %s985_s26, %s693_s30  ;;  %s698_s28 = sshll.u32 %s800_s21, 4  ;;  %s699_s28 = int_to_ptr.vmem [resolvable:$false] %s698_s28 }
  0x58   : > { %s700_s29 = scalar_lea.vmem %s699_s28, 1024  ;;  %p701_p7 = scmp.lt.s32.totalorder %s985_s26, %s699_s28 }
  0x59   : > { %p696_p11 = pnand %p694_p9, %p680_p12  ;;  %p702_p4 = scmp.lt.s32.totalorder %s700_s29, %s693_s30 }
  0x5b   : > { %p697_p0 = pneg %p696_p11  ;;  %p703_p13 = por %p702_p4, %p701_p7 }
  0x5d   : > { %p704_p6 = pnand %p703_p13, %p697_p0 }
  0x5f   : > { %707 = shalt.err (!%p704_p6)
}
  0x60   : > { %533 = dma.hbm_to_vmem [thread:$0]  (!%p981_p2), %s977_s8, 512, %s985_s26, %s987_s10, %s798_s11, %s798_s11, %s799_s18  }
  0x61   : > { %215 = sbr.rel (%p878_p8) target bundleno = 336 (0x150), region = 32  ;;  %s1021_s19 = sand.u32 (!%p878_p8), 1, %s778_s13  }
  0x62   : > { %s500_s4 = sshll.u32 (!%p878_p8), %s1021_s19, 5  ;;  %s218_s6 = scalar_lea.sflag (!%p878_p8), [#allocation3], %s1021_s19 }
  0x63   : > { %s221_s9 = scalar_lea.vmem (!%p878_p8), [#allocation2], %s500_s4  ;;  %p1126_p7 = scmp.ne.s32.totalorder (!%p878_p8), %s1120_s22, 0 }
  0x68   : > { %761 = dma.done.wait (%p1126_p7), %s218_s6, 512  }
  0x69   : > { %763 = vsyncadd (%p1126_p7), %s218_s6, 4294966784  ;;  %p1127_p2 = scmp.ne.s32.totalorder %s1118_s20, 0 }
  0x6b   : > { %765 = dma.done.wait (%p1127_p2), [#allocation6], 1024  }
  0x6c   : > { %767 = vsyncadd (%p1127_p2), [#allocation6], 4294966272  ;;  %v1035_v0 = vld [vmem:[%s221_s9 + $0x10] sm:$0xff]  ;;  %v1037_v1 = vld [vmem:[%s221_s9] sm:$0xff]  ;;  %s510_s20 = sshll.u32 %s786_s15, 9  ;;  %s251_s22 = scalar_lea.vmem [#allocation8], %s500_s4 }
  0x6d   : > { %264 = vadd.xlane.f32.xlu1 %v1035_v0  ;;  %260 = vadd.xlane.f32.xlu0 %v1037_v1  ;;  %v1041_v2 = vld [vmem:[%s221_s9 + $0x18] sm:$0xff]  ;;  %v257_v3 = vld [vmem:[%s221_s9 + $0x8] sm:$0xff]  ;;  %v268_v5 = vmul.f32 %v1037_v1, %v1037_v1  ;;  %v270_v7 = vmul.f32 %v1035_v0, %v1035_v0  ;;  %v308_v41 = vld [vmem:[#allocation5] sm:$0xff]  ;;  %s380_s24 = sshll.u32 %s251_s22, 4  ;;  %s1059_s8 = scalar_lea.hbm %s1113_s3, %s510_s20  ;;  %s1061_s24 = int_to_ptr.vmem [resolvable:$true] %s380_s24 }
  0x6e   : > { %v269_v4 = vmul.f32 %v257_v3, %v257_v3  ;;  %v271_v6 = vmul.f32 %v1041_v2, %v1041_v2  ;;  %v309_v40 = vld [vmem:[#allocation5 + $0x8] sm:$0xff]  ;;  %v311_v47 = vld [vmem:[#allocation5 + $0x18] sm:$0xff]  ;;  %v312_v49 = vld [vmem:[#allocation7] sm:$0xff]  ;;  %s365_s15 = scalar_lea.sflag [#allocation4], %s1021_s19  ;;  %s708_s26 = scalar_lea.vmem %s1061_s24, 512 }
  0x6f   : > { %v313_v45 = vld [vmem:[#allocation7 + $0x8] sm:$0xff]  ;;  %v310_v50 = vld [vmem:[#allocation5 + $0x10] sm:$0xff]  ;;  %v315_v59 = vld [vmem:[#allocation7 + $0x18] sm:$0xff]  ;;  %p709_p8 = scmp.ne.s32.totalorder %s1061_s24, %s708_s26  ;;  %p1128_p12 = scmp.ne.s32.totalorder %s1124_s25, 0 }
  0x70   : > { %v314_v63 = vld [vmem:[#allocation7 + $0x10] sm:$0xff]  ;;  %s801_s10 = smov [#allocation8]  }
  0x71   : > { %266 = vadd.xlane.f32.xlu1 %v1041_v2  ;;  %262 = vadd.xlane.f32.xlu0 %v257_v3  ;;  %p710_p1 = pnand %p709_p8, %p1128_p12  ;;  %s712_s7 = sshll.u32 %s801_s10, 4  ;;  %s713_s7 = int_to_ptr.vmem [resolvable:$false] %s712_s7 }
  0x72   : > { %s714_s30 = scalar_lea.vmem %s713_s7, 1024  ;;  %p715_p3 = scmp.lt.s32.totalorder %s1061_s24, %s713_s7 }
  0x73   : > { %p711_p10 = pneg %p710_p1  ;;  %p716_p5 = scmp.lt.s32.totalorder %s714_s30, %s708_s26 }
  0x75   : > { %274 = vadd.xlane.f32.xlu1 %v269_v4  ;;  %272 = vadd.xlane.f32.xlu0 %v268_v5  ;;  %p717_p9 = por %p716_p5, %p715_p3 }
  0x77   : > { %p718_p11 = pnand %p717_p9, %p711_p10 }
  0x79   : > { %278 = vadd.xlane.f32.xlu1 %v271_v6  ;;  %276 = vadd.xlane.f32.xlu0 %v270_v7 }
  0xfa   : > { %v265_v8 = vpop.xlane.xlu1 %264  ;;  %v261_v9 = vpop.xlane.xlu0 %260 }
  0xfb   : > { %v280_v12 = vmul.f32 0.0078125, %v261_v9  ;;  %v282_v14 = vmul.f32 0.0078125, %v265_v8 }
  0xfd   : > { %v288_v18 = vmul.f32 %v280_v12, %v280_v12  ;;  %v290_v24 = vmul.f32 %v282_v14, %v282_v14 }
  0xfe   : > { %v267_v10 = vpop.xlane.xlu1 %266  ;;  %v263_v11 = vpop.xlane.xlu0 %262 }
  0xff   : > { %v281_v13 = vmul.f32 0.0078125, %v263_v11  ;;  %v283_v15 = vmul.f32 0.0078125, %v267_v10 }
 0x101   : > { %v289_v19 = vmul.f32 %v281_v13, %v281_v13  ;;  %v291_v25 = vmul.f32 %v283_v15, %v283_v15 }
 0x102   : > { %v275_v16 = vpop.xlane.xlu1 %274  ;;  %v273_v17 = vpop.xlane.xlu0 %272 }
 0x103   : > { %v285_v20 = vmul.f32 0.0078125, %v275_v16  ;;  %v284_v21 = vmul.f32 0.0078125, %v273_v17 }
 0x105   : > { %v293_v22 = vsub.f32 %v285_v20, %v289_v19  ;;  %v292_v23 = vsub.f32 %v284_v21, %v288_v18 }
 0x106   : > { %v279_v26 = vpop.xlane.xlu1 %278  ;;  %v277_v27 = vpop.xlane.xlu0 %276 }
 0x107   : > { %v297_v28 = vmax.f32 %v293_v22, 0.0  ;;  %v296_v29 = vmax.f32 %v292_v23, 0.0  ;;  %v287_v30 = vmul.f32 0.0078125, %v279_v26  ;;  %v286_v31 = vmul.f32 0.0078125, %v277_v27 }
 0x109   : > { %v301_v32 = vadd.f32 1e-06, %v297_v28  ;;  %v300_v33 = vadd.f32 1e-06, %v296_v29  ;;  %v295_v34 = vsub.f32 %v287_v30, %v291_v25  ;;  %v294_v35 = vsub.f32 %v286_v31, %v290_v24 }
 0x10b   : > { %598 = vrsqrt.f32 %v301_v32  ;;  %v299_v36 = vmax.f32 %v295_v34, 0.0  ;;  %v298_v37 = vmax.f32 %v294_v35, 0.0 }
 0x10c   : > { %600 = vrsqrt.f32 %v300_v33 }
 0x10d   : > { %v303_v38 = vadd.f32 1e-06, %v299_v36  ;;  %v302_v39 = vadd.f32 1e-06, %v298_v37 }
 0x10f   : > { %602 = vrsqrt.f32 %v303_v38 }
 0x110   : > { %604 = vrsqrt.f32 %v302_v39 }
 0x115   : > { %v599_v42 = vpop.eup %598 }
 0x116   : > { %v601_v43 = vpop.eup %600  ;;  %v317_v44 = vmul.f32 %v599_v42, %v309_v40 }
 0x117   : > { %v316_v46 = vmul.f32 %v601_v43, %v308_v41 }
 0x118   : > { %v321_v48 = vmul.f32 %v317_v44, %v281_v13  ;;  %v329_v55 = vmul.f32 %v317_v44, %v257_v3 }
 0x119   : > { %v603_v51 = vpop.eup %602  ;;  %v320_v52 = vmul.f32 %v316_v46, %v280_v12  ;;  %v328_v58 = vmul.f32 %v316_v46, %v1037_v1 }
 0x11a   : > { %v605_v53 = vpop.eup %604  ;;  %v325_v54 = vsub.f32 %v313_v45, %v321_v48  ;;  %v319_v56 = vmul.f32 %v603_v51, %v311_v47 }
 0x11b   : > { %v324_v57 = vsub.f32 %v312_v49, %v320_v52  ;;  %v318_v60 = vmul.f32 %v605_v53, %v310_v50 }
 0x11c   : > { %v333_v61 = vadd.f32 %v329_v55, %v325_v54  ;;  %v323_v62 = vmul.f32 %v319_v56, %v283_v15  ;;  %v331_v8 = vmul.f32 %v319_v56, %v1041_v2 }
 0x11d   : > { %v332_v4 = vadd.f32 %v328_v58, %v324_v57  ;;  %v322_v5 = vmul.f32 %v318_v60, %v282_v14  ;;  %v330_v11 = vmul.f32 %v318_v60, %v1035_v0 }
 0x11e   : > { %v337_v6 = vsub.f32 0.0, %v333_v61  ;;  %v327_v7 = vsub.f32 %v315_v59, %v323_v62 }
 0x11f   : > { %v336_v9 = vsub.f32 0.0, %v332_v4  ;;  %v326_v10 = vsub.f32 %v314_v63, %v322_v5 }
 0x120   : > { %v342_v3 = vmul.f32 1.442695, %v337_v6  ;;  %v335_v12 = vadd.f32 %v331_v8, %v327_v7 }
 0x121   : > { %v340_v13 = vmul.f32 1.442695, %v336_v9  ;;  %v334_v16 = vadd.f32 %v330_v11, %v326_v10 }
 0x122   : > { %606 = vpow2.f32 %v342_v3  ;;  %v339_v1 = vsub.f32 0.0, %v335_v12 }
 0x123   : > { %608 = vpow2.f32 %v340_v13  ;;  %v338_v17 = vsub.f32 0.0, %v334_v16 }
 0x124   : > { %v346_v15 = vmul.f32 1.442695, %v339_v1 }
 0x125   : > { %v344_v18 = vmul.f32 1.442695, %v338_v17 }
 0x126   : > { %610 = vpow2.f32 %v346_v15 }
 0x127   : > { %612 = vpow2.f32 %v344_v18 }
 0x12c   : > { %v607_v14 = vpop.eup %606 }
 0x12d   : > { %v609_v19 = vpop.eup %608  ;;  %v349_v2 = vadd.f32 1.0, %v607_v14 }
 0x12e   : > { %v348_v20 = vadd.f32 1.0, %v609_v19 }
 0x12f   : > { %614 = vrcp.f32 %v349_v2 }
 0x130   : > { %v611_v0 = vpop.eup %610  ;;  %616 = vrcp.f32 %v348_v20 }
 0x131   : > { %v613_v21 = vpop.eup %612  ;;  %v351_v22 = vadd.f32 1.0, %v611_v0 }
 0x132   : > { %v350_v23 = vadd.f32 1.0, %v613_v21 }
 0x133   : > { %618 = vrcp.f32 %v351_v22 }
 0x134   : > { %620 = vrcp.f32 %v350_v23 }
 0x139   : > { %v615_v24 = vpop.eup %614 }
 0x13a   : > { %v617_v25 = vpop.eup %616  ;;  %v357_v26 = vmul.f32 %v615_v24, %v333_v61 }
 0x13b   : > { %v356_v27 = vmul.f32 %v617_v25, %v332_v4 }
 0x13c   : > { %361 = vst [vmem:[%s251_s22 + $0x8] sm:$0xff] %v357_v26 }
 0x13d   : > { %v619_v28 = vpop.eup %618  ;;  %360 = vst [vmem:[%s251_s22] sm:$0xff] %v356_v27 }
 0x13e   : > { %v621_v29 = vpop.eup %620  ;;  %v359_v30 = vmul.f32 %v619_v28, %v335_v12 }
 0x13f   : > { %v358_v31 = vmul.f32 %v621_v29, %v334_v16 }
 0x140   : > { %363 = vst [vmem:[%s251_s22 + $0x18] sm:$0xff] %v359_v30 }
 0x141   : > { %362 = vst [vmem:[%s251_s22 + $0x10] sm:$0xff] %v358_v31 }
 0x142   : > { %721 = shalt.err (!%p718_p11)
}
 0x143   : > { %s722_s21 = scalar_lea.hbm %s1059_s8, 512  ;;  %s726_s4 = scalar_lea.hbm %s1113_s3, 1024 }
 0x144   : > { %p723_p0 = scmp.ne.s32.totalorder %s1059_s8, %s722_s21  ;;  %p727_p6 = scmp.lt.u32.totalorder %s1059_s8, %s1113_s3 }
 0x145   : > { %p728_p7 = scmp.lt.u32.totalorder %s726_s4, %s722_s21  ;;  %p730_p8 = scmp.lt.u32.totalorder %s722_s21, %s1059_s8 }
 0x146   : > { %p724_p4 = pnand %p723_p0, %p1128_p12 }
 0x147   : > { %p729_p2 = por %p728_p7, %p727_p6 }
 0x148   : > { %p725_p13 = pneg %p724_p4 }
 0x149   : > { %p731_p1 = por %p730_p8, %p729_p2 }
 0x14b   : > { %p732_p10 = pnand %p731_p1, %p725_p13 }
 0x14d   : > { %735 = shalt.err (!%p732_p10)
}
 0x14e   : > { %s802_s20 = smov 128   ;;  %s803_s22 = smov 8  }
 0x14f   : > { %521 = dma.vmem_to_hbm [thread:$0]  (%p1128_p12), %s1061_s24, 512, %s1059_s8, %s365_s15, %s802_s20, %s802_s20, %s803_s22  }
 0x150 PF: > { %s395_s11 = sand.u32 1, %s774_s12   ;;  %p1129_p3 = scmp.ne.s32.totalorder %s1121_s23, 0 }
 0x151   : > { %p1130_p5 = scmp.ge.s32.totalorder %s794_s17, 2  ;;  %s396_s18 = scalar_lea.sflag [#allocation4], %s395_s11 }
 0x153   : > { %p535_p9 = pnand %p1130_p5, %p1129_p3 }
 0x155   : > { %769 = dma.done.wait (!%p535_p9), %s396_s18, 512  }
 0x156   : > { %771 = vsyncadd (!%p535_p9), %s396_s18, 4294966784  ;;  %s20_s17 = sadd.s32 1, %s794_s17   ;;  %s1131_s12 = smov %s778_s13 }
 0x157   : > { %p17_p11 = scmp.ge.s32.totalorder %s20_s17, 4   ;;  %s1132_s13 = smov %s782_s14 }
 0x158   : > { %s1133_s14 = smov %s972_s5  ;;  %s1134_s15 = smov %s790_s16 }
 0x159   : > { %s1135_s16 = smov %s1137_s27  ;;  %19 = sbr.rel (!%p17_p11) target bundleno = 7 (0x7), region = 87 }
 0x160   :  { %401 = vsyncpa [#allocation3], 1 }
 0x161   :  { %403 = vsyncpa [#allocation3 + $0x1], 1 }
 0x162   :  { %404 = vsyncpa [#allocation6], 1 }
 0x163   :  { %405 = vsyncpa [#allocation4], 1 }
 0x164   :  { %407 = vsyncpa [#allocation4 + $0x1], 1 }

</bundles_post_ra>
